<compile_context>
chip_gen: v5e
topology: v5e:2x2
jax: 0.10.0
libtpu: 0.0.40
codegen_flags: <defaults>
</compile_context>

<pallas_src>
import jax
import jax.numpy as jnp
from jax.experimental import pallas as pl
from jax.experimental.pallas import tpu as pltpu

LANE = 128          # lane width: pad every feature dim to this
IN_F = 4            # Linear #1 in_features
HID_F = 7           # Linear #1 out_features / Linear #2 in_features
OUT_F = 3           # Linear #2 out_features


def mlp_kernel(x_ref, w1_ref, b1_ref, w2_ref, b2_ref, o_ref):
    tb = x_ref.shape[0]                 # batch tile (static, multiple of 8)
    x = x_ref[...]                      # (tb, 128) f32, lanes >= IN_F are zero
    w1 = w1_ref[...]                    # (8, 128), rows >= IN_F / cols >= HID_F are zero
    w2 = w2_ref[...]                    # (8, 128), rows >= HID_F / cols >= OUT_F are zero

    # Layer 1: Linear(4->7) as 4 unrolled VPU broadcast-FMAs (contraction depth
    # is tiny; avoid MXU push + result-FIFO pop).  Padded lanes stay exactly 0.
    h = jnp.broadcast_to(b1_ref[...], (tb, LANE))
    for k in range(IN_F):
        h = h + x[:, k:k + 1] * w1[k:k + 1, :]
    h = jnp.tanh(h)                     # EUP slot; tanh(0)=0 keeps padding zero

    # Layer 2: Linear(7->3) as 7 unrolled FMAs.
    y = jnp.broadcast_to(b2_ref[...], (tb, LANE))
    for k in range(HID_F):
        y = y + h[:, k:k + 1] * w2[k:k + 1, :]

    o_ref[...] = y.astype(o_ref.dtype)  # lane-dense (tb, 128) unmasked store


def net_forward(x, w1, b1, w2, b2, *, max_tile_b=512):
    """x: (B, 4) f32; w1: (4, 7); b1: (1, 7); w2: (7, 3); b2: (1, 3) -> (B, 3)."""
    B = x.shape[0]
    bp = max(8, ((B + 7) // 8) * 8)           # sublane-align the batch
    tb = min(max_tile_b, bp)                  # batch tile per grid step
    bp = ((bp + tb - 1) // tb) * tb           # make grid divide evenly
    grid = (bp // tb,)

    # Zero-pad everything to lane-dense tiles (numerics unchanged).
    x_p = jnp.zeros((bp, LANE), jnp.float32).at[:B, :IN_F].set(x)
    w1_p = jnp.zeros((8, LANE), jnp.float32).at[:IN_F, :HID_F].set(w1)
    b1_p = jnp.zeros((1, LANE), jnp.float32).at[0, :HID_F].set(b1.reshape(-1))
    w2_p = jnp.zeros((8, LANE), jnp.float32).at[:HID_F, :OUT_F].set(w2)
    b2_p = jnp.zeros((1, LANE), jnp.float32).at[0, :OUT_F].set(b2.reshape(-1))

    cost = pl.CostEstimate(
        flops=2 * B * (IN_F * HID_F + HID_F * OUT_F),
        transcendentals=B * HID_F,
        bytes_accessed=4 * (B * IN_F + IN_F * HID_F + HID_F
                            + HID_F * OUT_F + OUT_F + B * OUT_F),
    )

    out_p = pl.pallas_call(
        mlp_kernel,
        out_shape=jax.ShapeDtypeStruct((bp, LANE), jnp.float32),
        grid=grid,
        in_specs=[
            pl.BlockSpec((tb, LANE), lambda i: (i, 0)),   # batch-streamed x
            pl.BlockSpec((8, LANE), lambda i: (0, 0)),    # weights stay VMEM-resident
            pl.BlockSpec((1, LANE), lambda i: (0, 0)),
            pl.BlockSpec((8, LANE), lambda i: (0, 0)),
            pl.BlockSpec((1, LANE), lambda i: (0, 0)),
        ],
        out_specs=pl.BlockSpec((tb, LANE), lambda i: (i, 0)),
        compiler_params=pltpu.CompilerParams(
            dimension_semantics=("parallel",)),           # v7x: shard batch over 2 TCs
        cost_estimate=cost,
    )(x_p, w1_p, b1_p, w2_p, b2_p)

    return out_p[:B, :OUT_F]


def init_params(key):
    """Deterministic init mimicking torch.nn.Linear default U(-1/sqrt(fan_in), ...)."""
    k1, k2, k3, k4 = jax.random.split(key, 4)
    bound1 = 1.0 / jnp.sqrt(4.0)
    bound2 = 1.0 / jnp.sqrt(7.0)
    w1 = jax.random.uniform(k1, (IN_F, HID_F), jnp.float32, -bound1, bound1)   # (in, out)
    b1 = jax.random.uniform(k2, (1, HID_F), jnp.float32, -bound1, bound1)
    w2 = jax.random.uniform(k3, (HID_F, OUT_F), jnp.float32, -bound2, bound2)
    b2 = jax.random.uniform(k4, (1, OUT_F), jnp.float32, -bound2, bound2)
    return w1, b1, w2, b2


if __name__ == "__main__":
    key = jax.random.PRNGKey(0)
    kx, kp = jax.random.split(key)
    x = jax.random.normal(kx, (5, 4), jnp.float32)   # matches torch.randn(5, 4)
    w1, b1, w2, b2 = init_params(kp)

    out = net_forward(x, w1, b1, w2, b2)
    out = jax.block_until_ready(out)

    # Reference check in plain JAX.
    ref = jnp.tanh(x @ w1 + b1) @ w2 + b2
    assert out.shape == (5, 3)
    assert jnp.allclose(out, ref, atol=1e-5, rtol=1e-5)
    print("KERNEL_OK")
</pallas_src>

<mosaic_0001>
module attributes {stable_mosaic.version = 11 : i64} {
  func.func @mlp_kernel(%arg0: i32, %arg1: memref<8x128xf32, #tpu.memory_space<vmem>>, %arg2: memref<8x128xf32, #tpu.memory_space<vmem>>, %arg3: memref<1x128xf32, #tpu.memory_space<vmem>>, %arg4: memref<8x128xf32, #tpu.memory_space<vmem>>, %arg5: memref<1x128xf32, #tpu.memory_space<vmem>>, %arg6: memref<8x128xf32, #tpu.memory_space<vmem>>) attributes {dimension_semantics = [#tpu.dimension_semantics<parallel>], iteration_bounds = array<i64: 1>, scalar_prefetch = 0 : i64, scratch_operands = 0 : i64, tpu.core_type = #tpu.core_type<tc>, window_params = [{transform_indices = @transform_0, window_bounds = array<i64: 8, 128>}, {pipeline_mode = #tpu.pipeline_mode<synchronous>, transform_indices = @transform_1, window_bounds = array<i64: 8, 128>}, {pipeline_mode = #tpu.pipeline_mode<synchronous>, transform_indices = @transform_2, window_bounds = array<i64: 1, 128>}, {pipeline_mode = #tpu.pipeline_mode<synchronous>, transform_indices = @transform_3, window_bounds = array<i64: 8, 128>}, {pipeline_mode = #tpu.pipeline_mode<synchronous>, transform_indices = @transform_4, window_bounds = array<i64: 1, 128>}, {transform_indices = @transform_5, window_bounds = array<i64: 8, 128>}]} {
    %c0 = arith.constant 0 : index
    %c0_0 = arith.constant 0 : index
    %0 = vector.load %arg1[%c0, %c0_0] : memref<8x128xf32, #tpu.memory_space<vmem>>, vector<8x128xf32>
    %c0_1 = arith.constant 0 : index
    %c0_2 = arith.constant 0 : index
    %1 = vector.load %arg2[%c0_1, %c0_2] : memref<8x128xf32, #tpu.memory_space<vmem>>, vector<8x128xf32>
    %c0_3 = arith.constant 0 : index
    %c0_4 = arith.constant 0 : index
    %2 = vector.load %arg4[%c0_3, %c0_4] : memref<8x128xf32, #tpu.memory_space<vmem>>, vector<8x128xf32>
    %c0_5 = arith.constant 0 : index
    %c0_6 = arith.constant 0 : index
    %3 = vector.load %arg3[%c0_5, %c0_6] : memref<1x128xf32, #tpu.memory_space<vmem>>, vector<1x128xf32>
    %4 = vector.shape_cast %3 : vector<1x128xf32> to vector<1x128xf32>
    %5 = vector.broadcast %4 : vector<1x128xf32> to vector<8x128xf32>
    %6 = vector.extract_strided_slice %0 {offsets = [0, 0], sizes = [8, 1], strides = [1, 1]} : vector<8x128xf32> to vector<8x1xf32>
    %7 = vector.extract_strided_slice %1 {offsets = [0, 0], sizes = [1, 128], strides = [1, 1]} : vector<8x128xf32> to vector<1x128xf32>
    %8 = vector.broadcast %6 : vector<8x1xf32> to vector<8x128xf32>
    %9 = vector.broadcast %7 : vector<1x128xf32> to vector<8x128xf32>
    %10 = arith.mulf %8, %9 : vector<8x128xf32>
    %11 = arith.addf %5, %10 : vector<8x128xf32>
    %12 = vector.extract_strided_slice %0 {offsets = [0, 1], sizes = [8, 1], strides = [1, 1]} : vector<8x128xf32> to vector<8x1xf32>
    %13 = vector.extract_strided_slice %1 {offsets = [1, 0], sizes = [1, 128], strides = [1, 1]} : vector<8x128xf32> to vector<1x128xf32>
    %14 = vector.broadcast %12 : vector<8x1xf32> to vector<8x128xf32>
    %15 = vector.broadcast %13 : vector<1x128xf32> to vector<8x128xf32>
    %16 = arith.mulf %14, %15 : vector<8x128xf32>
    %17 = arith.addf %11, %16 : vector<8x128xf32>
    %18 = vector.extract_strided_slice %0 {offsets = [0, 2], sizes = [8, 1], strides = [1, 1]} : vector<8x128xf32> to vector<8x1xf32>
    %19 = vector.extract_strided_slice %1 {offsets = [2, 0], sizes = [1, 128], strides = [1, 1]} : vector<8x128xf32> to vector<1x128xf32>
    %20 = vector.broadcast %18 : vector<8x1xf32> to vector<8x128xf32>
    %21 = vector.broadcast %19 : vector<1x128xf32> to vector<8x128xf32>
    %22 = arith.mulf %20, %21 : vector<8x128xf32>
    %23 = arith.addf %17, %22 : vector<8x128xf32>
    %24 = vector.extract_strided_slice %0 {offsets = [0, 3], sizes = [8, 1], strides = [1, 1]} : vector<8x128xf32> to vector<8x1xf32>
    %25 = vector.extract_strided_slice %1 {offsets = [3, 0], sizes = [1, 128], strides = [1, 1]} : vector<8x128xf32> to vector<1x128xf32>
    %26 = vector.broadcast %24 : vector<8x1xf32> to vector<8x128xf32>
    %27 = vector.broadcast %25 : vector<1x128xf32> to vector<8x128xf32>
    %28 = arith.mulf %26, %27 : vector<8x128xf32>
    %29 = arith.addf %23, %28 : vector<8x128xf32>
    %30 = math.tanh %29 : vector<8x128xf32>
    %c0_7 = arith.constant 0 : index
    %c0_8 = arith.constant 0 : index
    %31 = vector.load %arg5[%c0_7, %c0_8] : memref<1x128xf32, #tpu.memory_space<vmem>>, vector<1x128xf32>
    %32 = vector.shape_cast %31 : vector<1x128xf32> to vector<1x128xf32>
    %33 = vector.broadcast %32 : vector<1x128xf32> to vector<8x128xf32>
    %34 = vector.extract_strided_slice %30 {offsets = [0, 0], sizes = [8, 1], strides = [1, 1]} : vector<8x128xf32> to vector<8x1xf32>
    %35 = vector.extract_strided_slice %2 {offsets = [0, 0], sizes = [1, 128], strides = [1, 1]} : vector<8x128xf32> to vector<1x128xf32>
    %36 = vector.broadcast %34 : vector<8x1xf32> to vector<8x128xf32>
    %37 = vector.broadcast %35 : vector<1x128xf32> to vector<8x128xf32>
    %38 = arith.mulf %36, %37 : vector<8x128xf32>
    %39 = arith.addf %33, %38 : vector<8x128xf32>
    %40 = vector.extract_strided_slice %30 {offsets = [0, 1], sizes = [8, 1], strides = [1, 1]} : vector<8x128xf32> to vector<8x1xf32>
    %41 = vector.extract_strided_slice %2 {offsets = [1, 0], sizes = [1, 128], strides = [1, 1]} : vector<8x128xf32> to vector<1x128xf32>
    %42 = vector.broadcast %40 : vector<8x1xf32> to vector<8x128xf32>
    %43 = vector.broadcast %41 : vector<1x128xf32> to vector<8x128xf32>
    %44 = arith.mulf %42, %43 : vector<8x128xf32>
    %45 = arith.addf %39, %44 : vector<8x128xf32>
    %46 = vector.extract_strided_slice %30 {offsets = [0, 2], sizes = [8, 1], strides = [1, 1]} : vector<8x128xf32> to vector<8x1xf32>
    %47 = vector.extract_strided_slice %2 {offsets = [2, 0], sizes = [1, 128], strides = [1, 1]} : vector<8x128xf32> to vector<1x128xf32>
    %48 = vector.broadcast %46 : vector<8x1xf32> to vector<8x128xf32>
    %49 = vector.broadcast %47 : vector<1x128xf32> to vector<8x128xf32>
    %50 = arith.mulf %48, %49 : vector<8x128xf32>
    %51 = arith.addf %45, %50 : vector<8x128xf32>
    %52 = vector.extract_strided_slice %30 {offsets = [0, 3], sizes = [8, 1], strides = [1, 1]} : vector<8x128xf32> to vector<8x1xf32>
    %53 = vector.extract_strided_slice %2 {offsets = [3, 0], sizes = [1, 128], strides = [1, 1]} : vector<8x128xf32> to vector<1x128xf32>
    %54 = vector.broadcast %52 : vector<8x1xf32> to vector<8x128xf32>
    %55 = vector.broadcast %53 : vector<1x128xf32> to vector<8x128xf32>
    %56 = arith.mulf %54, %55 : vector<8x128xf32>
    %57 = arith.addf %51, %56 : vector<8x128xf32>
    %58 = vector.extract_strided_slice %30 {offsets = [0, 4], sizes = [8, 1], strides = [1, 1]} : vector<8x128xf32> to vector<8x1xf32>
    %59 = vector.extract_strided_slice %2 {offsets = [4, 0], sizes = [1, 128], strides = [1, 1]} : vector<8x128xf32> to vector<1x128xf32>
    %60 = vector.broadcast %58 : vector<8x1xf32> to vector<8x128xf32>
    %61 = vector.broadcast %59 : vector<1x128xf32> to vector<8x128xf32>
    %62 = arith.mulf %60, %61 : vector<8x128xf32>
    %63 = arith.addf %57, %62 : vector<8x128xf32>
    %64 = vector.extract_strided_slice %30 {offsets = [0, 5], sizes = [8, 1], strides = [1, 1]} : vector<8x128xf32> to vector<8x1xf32>
    %65 = vector.extract_strided_slice %2 {offsets = [5, 0], sizes = [1, 128], strides = [1, 1]} : vector<8x128xf32> to vector<1x128xf32>
    %66 = vector.broadcast %64 : vector<8x1xf32> to vector<8x128xf32>
    %67 = vector.broadcast %65 : vector<1x128xf32> to vector<8x128xf32>
    %68 = arith.mulf %66, %67 : vector<8x128xf32>
    %69 = arith.addf %63, %68 : vector<8x128xf32>
    %70 = vector.extract_strided_slice %30 {offsets = [0, 6], sizes = [8, 1], strides = [1, 1]} : vector<8x128xf32> to vector<8x1xf32>
    %71 = vector.extract_strided_slice %2 {offsets = [6, 0], sizes = [1, 128], strides = [1, 1]} : vector<8x128xf32> to vector<1x128xf32>
    %72 = vector.broadcast %70 : vector<8x1xf32> to vector<8x128xf32>
    %73 = vector.broadcast %71 : vector<1x128xf32> to vector<8x128xf32>
    %74 = arith.mulf %72, %73 : vector<8x128xf32>
    %75 = arith.addf %69, %74 : vector<8x128xf32>
    %c0_9 = arith.constant 0 : index
    %c0_10 = arith.constant 0 : index
    %76 = vector.load %arg6[%c0_9, %c0_10] : memref<8x128xf32, #tpu.memory_space<vmem>>, vector<8x128xf32>
    tpu.vector_store %arg6[%c0_9, %c0_10], %75 {strides = array<i32>} : memref<8x128xf32, #tpu.memory_space<vmem>>, vector<8x128xf32>,
    return
  }
  func.func @transform_0(%arg0: i32) -> (i32, i32) {
    %c0_i32 = arith.constant 0 : i32
    %c0_i32_0 = arith.constant 0 : i32
    return %arg0, %c0_i32 : i32, i32
  }
  func.func @transform_1(%arg0: i32) -> (i32, i32) {
    %c0_i32 = arith.constant 0 : i32
    %c0_i32_0 = arith.constant 0 : i32
    %c0_i32_1 = arith.constant 0 : i32
    return %c0_i32, %c0_i32_0 : i32, i32
  }
  func.func @transform_2(%arg0: i32) -> (i32, i32) {
    %c0_i32 = arith.constant 0 : i32
    %c0_i32_0 = arith.constant 0 : i32
    %c0_i32_1 = arith.constant 0 : i32
    return %c0_i32, %c0_i32_0 : i32, i32
  }
  func.func @transform_3(%arg0: i32) -> (i32, i32) {
    %c0_i32 = arith.constant 0 : i32
    %c0_i32_0 = arith.constant 0 : i32
    %c0_i32_1 = arith.constant 0 : i32
    return %c0_i32, %c0_i32_0 : i32, i32
  }
  func.func @transform_4(%arg0: i32) -> (i32, i32) {
    %c0_i32 = arith.constant 0 : i32
    %c0_i32_0 = arith.constant 0 : i32
    %c0_i32_1 = arith.constant 0 : i32
    return %c0_i32, %c0_i32_0 : i32, i32
  }
  func.func @transform_5(%arg0: i32) -> (i32, i32) {
    %c0_i32 = arith.constant 0 : i32
    %c0_i32_0 = arith.constant 0 : i32
    return %arg0, %c0_i32 : i32, i32
  }
}

</mosaic_0001>

<bundles_post_ra>
// kernel: tpu_custom_call.1
= control target key start
LH: loop header
LB: loop body
LE: loop exit
PB: predicated region body
PF: predicated region fallthrough
CT: control target
= control target key end

     0   :  { %10 = vsyncpa [#allocation3], 0  ;;  %s360_s0 = inlined_call_operand.hbm [shape: f32[8,128], index: 0, kind: input, shape index: {}]   ;;  %s361_s1 = inlined_call_operand.hbm [shape: f32[8,128], index: 1, kind: input, shape index: {}]   ;;  %s362_s2 = inlined_call_operand.vmem [shape: f32[1,128], index: 2, kind: input, shape index: {}]   ;;  %s363_s3 = inlined_call_operand.hbm [shape: f32[8,128], index: 3, kind: input, shape index: {}]   ;;  %s364_s4 = inlined_call_operand.vmem [shape: f32[1,128], index: 4, kind: input, shape index: {}]   ;;  %s365_s5 = inlined_call_operand.hbm [shape: f32[8,128], index: 5, kind: output, shape index: {}]  }
   0x1   :  { %11 = vsyncpa [#allocation6], 0  ;;  %s29_s20 = sshll.u32 %s361_s1, 4  ;;  %s30_s20 = int_to_ptr.hbm [resolvable:$true] %s29_s20 }
   0x2   :  { %12 = vsyncpa [#allocation4], 0  ;;  %s301_s21 = smov [#allocation5]   ;;  %s18_s25 = sshll.u32 %s360_s0, 4  ;;  %s19_s25 = int_to_ptr.hbm [resolvable:$true] %s18_s25 }
   0x3   :  { %s31_s22 = sshll.u32 %s301_s21, 4  ;;  %s302_s26 = smov [#allocation2]   ;;  %s32_s22 = int_to_ptr.vmem [resolvable:$true] %s31_s22 }
   0x4   :  { %34 = dma.hbm_to_vmem [thread:$0]  %s30_s20, 128, %s32_s22, [#allocation6]  }
   0x5   :  { %s20_s27 = sshll.u32 %s302_s26, 4  ;;  %s42_s30 = sshll.u32 %s363_s3, 4  ;;  %s21_s27 = int_to_ptr.vmem [resolvable:$true] %s20_s27  ;;  %s43_s30 = int_to_ptr.hbm [resolvable:$true] %s42_s30 }
   0x6   :  { %23 = dma.hbm_to_vmem [thread:$0]  %s19_s25, 128, %s21_s27, [#allocation3]  }
   0x7   :  { %s303_s1 = smov [#allocation7]  }
   0x8   :  { %s44_s6 = sshll.u32 %s303_s1, 4  ;;  %s45_s6 = int_to_ptr.vmem [resolvable:$true] %s44_s6 }
   0x9   :  { %47 = dma.hbm_to_vmem [thread:$0]  %s43_s30, 128, %s45_s6, [#allocation6]  }
   0xa   :  { %295 = dma.done.wait [#allocation3], 128  }
   0xb   :  { %296 = vsyncadd [#allocation3], 4294967168 }
   0xc   :  { %297 = dma.done.wait [#allocation6], 256  }
   0xd   :  { %298 = vsyncadd [#allocation6], 4294967040  ;;  %v304_v0 = vmov 0   ;;  %v305_v1 = vmov 2   ;;  %v62_v2 = vld [vmem:[#allocation2] sm:$0xff]  ;;  %v306_v3 = vmov 1  }
   0xe   :  { %183 = vset.pattern.permute.xlu0 %v304_v0  ;;  %185 = vset.pattern.permute.xlu1 %v305_v1  ;;  %v307_v4 = vmov 3   ;;  %v308_v5 = vmov 4   ;;  %v63_v6 = vld [vmem:[#allocation5] sm:$0xff]  ;;  %v195_v10 = vld [vmem:[%s362_s2] ss:$0 sm:$0xff]  ;;  %v309_v25 = vmov 5  }
   0xf   :  { %187 = vset.pattern.permute.xlu2 %v304_v0  ;;  %71 = vperm.xlu0 %183, %v62_v2   ;;  %v74_v9 = vperm.slane %v63_v6, 0  ;;  %v81_v12 = vperm.slane %v63_v6, 1  ;;  %v88_v13 = vperm.slane %v63_v6, 2  ;;  %v95_v14 = vperm.slane %v63_v6, 3  ;;  %v64_v28 = vld [vmem:[#allocation7] sm:$0xff]  ;;  %s161_s11 = sshll.u32 %s365_s5, 4  ;;  %s162_s11 = int_to_ptr.hbm [resolvable:$true] %s161_s11 }
  0x10   :  { %85 = vperm.xlu1 %185, %v62_v2   ;;  %v310_v26 = vmov 6   ;;  %v108_v30 = vperm.slane %v64_v28, 0  ;;  %v115_v31 = vperm.slane %v64_v28, 1  ;;  %v196_v32 = vld [vmem:[%s364_s4] ss:$0 sm:$0xff]  ;;  %v122_v35 = vperm.slane %v64_v28, 2 }
  0x11   :  { %v129_v38 = vperm.slane %v64_v28, 3  ;;  %v136_v44 = vperm.slane %v64_v28, 4  ;;  %v143_v47 = vperm.slane %v64_v28, 5  ;;  %v150_v49 = vperm.slane %v64_v28, 6  ;;  %s311_s4 = smov [#allocation8]  }
  0x12   :  { %s159_s8 = sshll.u32 %s311_s4, 4  ;;  %s160_s8 = int_to_ptr.vmem [resolvable:$true] %s159_s8 }
  0x17   :  { %184 = vset.pattern.permute.xlu0 %v306_v3 }
  0x18   :  { %186 = vset.pattern.permute.xlu1 %v307_v4  ;;  %78 = vperm.xlu0 %184, %v62_v2  }
  0x19   :  { %92 = vperm.xlu1 %186, %v62_v2  }
  0x20   :  { %191 = vset.pattern.permute.xlu0 %v308_v5 }
  0x21   :  { %189 = vset.pattern.permute.xlu1 %v305_v1 }
  0x81   :  { %v72_v7 = vpop.permute.xlu0 %71 }
  0x82   :  { %v86_v8 = vpop.permute.xlu1 %85  ;;  %v75_v11 = vmul.f32 %v74_v9, %v72_v7 }
  0x83   :  { %v89_v19 = vmul.f32 %v88_v13, %v86_v8 }
  0x84   :  { %v76_v17 = vadd.f32 %v195_v10, %v75_v11 }
  0x8a   :  { %v79_v15 = vpop.permute.xlu0 %78 }
  0x8b   :  { %v93_v16 = vpop.permute.xlu1 %92  ;;  %v82_v18 = vmul.f32 %v81_v12, %v79_v15 }
  0x8c   :  { %v96_v21 = vmul.f32 %v95_v14, %v93_v16 }
  0x8d   :  { %v83_v20 = vadd.f32 %v82_v18, %v76_v17 }
  0x8f   :  { %v90_v22 = vadd.f32 %v89_v19, %v83_v20 }
  0x91   :  { %v97_v23 = vadd.f32 %v96_v21, %v90_v22 }
  0x93   :  { %197 = vtanh.f32 %v97_v23 }
  0x99   :  { %v198_v24 = vpop.eup %197 }
  0x9a   :  { %133 = vperm.xlu0 %191, %v198_v24   ;;  %119 = vperm.xlu1 %189, %v198_v24  }
  0x9b   :  { %105 = vperm.xlu2 %187, %v198_v24  }
  0xa2   :  { %192 = vset.pattern.permute.xlu1 %v309_v25  ;;  %194 = vset.pattern.permute.xlu0 %v310_v26 }
  0xa3   :  { %188 = vset.pattern.permute.xlu2 %v306_v3  ;;  %140 = vperm.xlu1 %192, %v198_v24  }
  0xa4   :  { %112 = vperm.xlu2 %188, %v198_v24  }
  0xac   :  { %190 = vset.pattern.permute.xlu2 %v307_v4 }
  0xad   :  { %126 = vperm.xlu2 %190, %v198_v24  }
  0xb5   :  { %193 = vset.pattern.permute.xlu2 %v310_v26 }
  0xb6   :  { %147 = vperm.xlu2 %193, %v198_v24  }
  0xf5   :  { %v106_v27 = vpop.permute.xlu2 %105 }
  0xf6   :  { %v109_v33 = vmul.f32 %v108_v30, %v106_v27 }
  0xf8   :  { %v110_v36 = vadd.f32 %v196_v32, %v109_v33 }
  0xfe   :  { %v113_v29 = vpop.permute.xlu2 %112 }
  0xff   :  { %v116_v34 = vmul.f32 %v115_v31, %v113_v29 }
 0x101   :  { %v117_v40 = vadd.f32 %v116_v34, %v110_v36 }
 0x107   :  { %v127_v37 = vpop.permute.xlu2 %126 }
 0x108   :  { %v130_v43 = vmul.f32 %v129_v38, %v127_v37 }
 0x10c   :  { %v120_v39 = vpop.permute.xlu1 %119  ;;  %v134_v45 = vpop.permute.xlu0 %133 }
 0x10d   :  { %v123_v41 = vmul.f32 %v122_v35, %v120_v39  ;;  %v137_v48 = vmul.f32 %v136_v44, %v134_v45 }
 0x10f   :  { %v124_v42 = vadd.f32 %v123_v41, %v117_v40 }
 0x110   :  { %v148_v50 = vpop.permute.xlu2 %147 }
 0x111   :  { %v131_v46 = vadd.f32 %v130_v43, %v124_v42  ;;  %v151_v54 = vmul.f32 %v150_v49, %v148_v50 }
 0x113   :  { %v138_v52 = vadd.f32 %v137_v48, %v131_v46 }
 0x115   :  { %v141_v51 = vpop.permute.xlu1 %140 }
 0x116   :  { %v144_v53 = vmul.f32 %v143_v47, %v141_v51 }
 0x118   :  { %v145_v55 = vadd.f32 %v144_v53, %v138_v52 }
 0x11a   :  { %v152_v56 = vadd.f32 %v151_v54, %v145_v55 }
 0x11c   :  { %153 = vst [vmem:[#allocation8] sm:$0xff] %v152_v56 }
 0x11d   :  { %164 = dma.vmem_to_hbm [thread:$0]  %s160_s8, 128, %s162_s11, [#allocation4]  }
 0x11e   :  { %299 = dma.done.wait [#allocation4], 128  }
 0x11f   :  { %300 = vsyncadd [#allocation4], 4294967168 }
 0x120   :  { %169 = vsyncpa [#allocation3], 1 }
 0x121   :  { %170 = vsyncpa [#allocation6], 1 }
 0x122   :  { %171 = vsyncpa [#allocation4], 1 }

</bundles_post_ra>
